<compile_context>
chip_gen: v7x
topology: tpu7x:2x2x1
jax: 0.10.0
libtpu: 0.0.40
codegen_flags: <defaults>
</compile_context>

<pallas_src>
import functools

import jax
import jax.numpy as jnp
from jax import lax
from jax.experimental import pallas as pl
from jax.experimental.pallas import tpu as pltpu


# ---------------------------------------------------------------------------
# Pallas kernel: tiled GEMM + bias + PReLU epilogue
#   patches: (M, K) rows = output spatial positions, K = win*win*Cin (lanes)
#   weights: (K, Nout) Nout = s*s*Cout padded to a multiple of 128 (lanes)
# ---------------------------------------------------------------------------
def _gemm_bias_prelu_kernel(p_ref, w_ref, b_ref, a_ref, o_ref, acc_ref):
    @pl.when(pl.program_id(2) == 0)
    def _init():
        acc_ref[...] = jnp.zeros_like(acc_ref)

    acc_ref[...] += jnp.dot(p_ref[...], w_ref[...],
                            preferred_element_type=jnp.float32)

    @pl.when(pl.program_id(2) == pl.num_programs(2) - 1)
    def _finalize():
        y = acc_ref[...] + b_ref[...]            # (TM, TN) + (1, TN)
        alpha = a_ref[0, 0]                      # scalar from SMEM
        y = jnp.where(y >= 0, y, alpha * y)      # PReLU / ReLU / LeakyReLU / identity
        o_ref[...] = y.astype(o_ref.dtype)


def _round_up(x, m):
    return (x + m - 1) // m * m


def _pick_k_tile(kp):
    if kp <= 512:
        return kp
    for cand in (512, 256, 128):
        if kp % cand == 0:
            return cand
    return 128


def gemm_bias_prelu(patches, w_mat, bias, alpha, *, tm=256, tn=128, use_bf16=False):
    """Pallas tiled GEMM: PReLU(patches @ w_mat + bias)."""
    M, K = patches.shape
    K2, Nout = w_mat.shape
    assert K == K2

    tm = min(tm, _round_up(M, 8))
    Mp = _round_up(M, tm)
    Kp = _round_up(K, 128)
    Np = _round_up(Nout, tn)
    tk = _pick_k_tile(Kp)

    compute_dtype = jnp.bfloat16 if use_bf16 else jnp.float32
    patches_p = jnp.pad(patches, ((0, Mp - M), (0, Kp - K))).astype(compute_dtype)
    w_p = jnp.pad(w_mat, ((0, Kp - K), (0, Np - Nout))).astype(compute_dtype)
    b_p = jnp.pad(bias.reshape(1, -1).astype(jnp.float32), ((0, 0), (0, Np - Nout)))
    a2 = jnp.asarray(alpha, jnp.float32).reshape(1, 1)

    grid = (Mp // tm, Np // tn, Kp // tk)

    out = pl.pallas_call(
        _gemm_bias_prelu_kernel,
        out_shape=jax.ShapeDtypeStruct((Mp, Np), jnp.float32),
        grid_spec=pltpu.PrefetchScalarGridSpec(
            num_scalar_prefetch=0,
            grid=grid,
            in_specs=[
                pl.BlockSpec((tm, tk), lambda i, j, kk: (i, kk)),   # patches tile
                pl.BlockSpec((tk, tn), lambda i, j, kk: (kk, j)),   # weight tile
                pl.BlockSpec((1, tn), lambda i, j, kk: (0, j)),     # bias row
                pl.BlockSpec(memory_space=pltpu.MemorySpace.SMEM),  # alpha scalar
            ],
            out_specs=pl.BlockSpec((tm, tn), lambda i, j, kk: (i, j)),
            scratch_shapes=[pltpu.VMEM((tm, tn), jnp.float32)],
        ),
        compiler_params=pltpu.CompilerParams(
            dimension_semantics=("parallel", "parallel", "arbitrary"),
            vmem_limit_bytes=32 * 1024 * 1024,
        ),
        cost_estimate=pl.CostEstimate(
            flops=2 * Mp * Kp * Np,
            transcendentals=0,
            bytes_accessed=4 * (Mp * Kp + Kp * Np + Mp * Np),
        ),
    )(patches_p, w_p, b_p, a2)

    return out[:M, :Nout]


# ---------------------------------------------------------------------------
# Glue: subpixel (weight-folded) formulation of ConvTranspose2d
# ---------------------------------------------------------------------------
def _deconv_patch_geometry(k, s, p):
    """Input-window geometry of the subpixel reformulation."""
    offs = []
    for r in range(s):
        for kk in range(k):
            if (r + p - kk) % s == 0:
                offs.append((r + p - kk) // s)
    lo, hi = min(offs), max(offs)
    win = hi - lo + 1
    return win, -lo, hi   # window size, left pad, right pad


def _im2col_nhwc(x_nhwc, win, pad_lo, pad_hi):
    """Stride-1 patch extraction in channels-last layout -> (N*H*W, win*win*C)."""
    N, H, W, C = x_nhwc.shape
    xp = jnp.pad(x_nhwc, ((0, 0), (pad_lo, pad_hi), (pad_lo, pad_hi), (0, 0)))
    ii = jnp.arange(H)[:, None] + jnp.arange(win)[None, :]          # (H, win)
    jj = jnp.arange(W)[:, None] + jnp.arange(win)[None, :]          # (W, win)
    patches = xp[:, ii[:, :, None, None], jj[None, None, :, :], :]  # (N,H,win,W,win,C)
    patches = patches.transpose(0, 1, 3, 2, 4, 5)                   # (N,H,W,win,win,C)
    return patches.reshape(N * H * W, win * win * C)


def _fold_deconv_weight(w, k, s, p, win, pad_lo):
    """(Cin, Cout, k, k) ConvTranspose2d weight -> (win*win*Cin, s*s*Cout) GEMM weight."""
    Cin, Cout = int(w.shape[0]), int(w.shape[1])
    wm = jnp.zeros((win, win, Cin, s, s, Cout), jnp.float32)
    for ry in range(s):
        for rx in range(s):
            for dy in range(win):
                ky = ry + p + s * (pad_lo - dy)
                if not 0 <= ky < k:
                    continue
                for dx in range(win):
                    kx = rx + p + s * (pad_lo - dx)
                    if not 0 <= kx < k:
                        continue
                    wm = wm.at[dy, dx, :, ry, rx, :].set(w[:, :, ky, kx])
    return wm.reshape(win * win * Cin, s * s * Cout)


def _activation_alpha(activation, alpha):
    if activation == "prelu":
        return jnp.asarray(alpha, jnp.float32)
    if activation == "relu":
        return jnp.float32(0.0)
    if activation == "lrelu":
        return jnp.float32(0.2)
    if activation is None:
        return jnp.float32(1.0)
    raise NotImplementedError(f"activation {activation!r} not supported in this kernel")


# ---------------------------------------------------------------------------
# DeconvBlock forward:  act(ConvTranspose2d(x) + bias)      (norm=None default)
# ---------------------------------------------------------------------------
def deconv_block_forward(x, params, *, k=4, s=2, p=1, activation="prelu",
                         use_bf16=False):
    N, Cin, H, W = x.shape
    w, b = params["w"], params["b"]
    Cout = int(w.shape[1])
    assert k - 2 * p == s, "subpixel path implemented for k == s + 2p (module default 4,2,1)"

    win, pad_lo, pad_hi = _deconv_patch_geometry(k, s, p)

    # channels-last activations throughout; NCHW only at the public boundary
    x_nhwc = jnp.transpose(x, (0, 2, 3, 1))
    patches = _im2col_nhwc(x_nhwc, win, pad_lo, pad_hi)          # (N*H*W, win*win*Cin)
    w_mat = _fold_deconv_weight(w, k, s, p, win, pad_lo)         # (win*win*Cin, s*s*Cout)
    b_fold = jnp.tile(b.astype(jnp.float32), (s * s,))           # (s*s*Cout,)
    alpha = _activation_alpha(activation, params.get("alpha", 0.25))

    out_mat = gemm_bias_prelu(patches, w_mat, b_fold, alpha,
                              use_bf16=use_bf16)                 # (N*H*W, s*s*Cout)

    # depth-to-space: (n, qy, qx, ry, rx, co) -> (n, s*qy+ry, s*qx+rx, co)
    out = out_mat.reshape(N, H, W, s, s, Cout)
    out = out.transpose(0, 1, 3, 2, 4, 5).reshape(N, H * s, W * s, Cout)
    return out.transpose(0, 3, 1, 2)                             # NCHW


# ---------------------------------------------------------------------------
# Pure-JAX reference (for correctness check)
# ---------------------------------------------------------------------------
def ref_deconv_block(x, params, *, k=4, s=2, p=1):
    w, b, alpha = params["w"], params["b"], params["alpha"]
    wc = jnp.flip(w, axis=(2, 3)).transpose(1, 0, 2, 3)          # (Cout, Cin, k, k)
    y = lax.conv_general_dilated(
        x, wc, window_strides=(1, 1),
        padding=((k - 1 - p, k - 1 - p), (k - 1 - p, k - 1 - p)),
        lhs_dilation=(s, s),
        dimension_numbers=("NCHW", "OIHW", "NCHW"))
    y = y + b[None, :, None, None]
    return jnp.where(y >= 0, y, alpha * y)                       # PReLU


# ---------------------------------------------------------------------------
if __name__ == "__main__":
    N, Cin, H, W = 2, 4, 16, 16
    Cout = 8
    k, s, p = 4, 2, 1        # DeconvBlock defaults

    key = jax.random.PRNGKey(0)
    k0, k1, k2 = jax.random.split(key, 3)
    x = jax.random.normal(k0, (N, Cin, H, W), jnp.float32)
    params = {
        # PyTorch ConvTranspose2d weight layout: (Cin, Cout, kH, kW)
        "w": jax.random.normal(k1, (Cin, Cout, k, k), jnp.float32) * 0.05,
        "b": jax.random.normal(k2, (Cout,), jnp.float32) * 0.05,
        "alpha": jnp.float32(0.25),   # PyTorch PReLU default init
    }

    fwd = jax.jit(functools.partial(deconv_block_forward, k=k, s=s, p=p))
    out = jax.block_until_ready(fwd(x, params))

    ref = ref_deconv_block(x, params, k=k, s=s, p=p)
    Ho = (H - 1) * s - 2 * p + k
    Wo = (W - 1) * s - 2 * p + k
    assert out.shape == (N, Cout, Ho, Wo), out.shape
    err = float(jnp.max(jnp.abs(out - ref)))
    assert err < 1e-4, f"mismatch vs reference: {err}"

    print("KERNEL_OK")
</pallas_src>

<mosaic_0001>
module attributes {stable_mosaic.version = 11 : i64} {
  func.func @_gemm_bias_prelu_kernel(%arg0: i32, %arg1: i32, %arg2: i32, %arg3: memref<256x128xf32, #tpu.memory_space<vmem>>, %arg4: memref<128x128xf32, #tpu.memory_space<vmem>>, %arg5: memref<1x128xf32, #tpu.memory_space<vmem>>, %arg6: memref<1x1xf32, #tpu.memory_space<smem>>, %arg7: memref<256x128xf32, #tpu.memory_space<vmem>>, %arg8: memref<256x128xf32, #tpu.memory_space<vmem>>) attributes {dimension_semantics = [#tpu.dimension_semantics<parallel>, #tpu.dimension_semantics<parallel>, #tpu.dimension_semantics<arbitrary>], iteration_bounds = array<i64: 2, 1, 1>, scalar_prefetch = 0 : i64, scratch_operands = 1 : i64, tpu.core_type = #tpu.core_type<tc>, window_params = [{transform_indices = @transform_0, window_bounds = array<i64: 256, 128>}, {transform_indices = @transform_1, window_bounds = array<i64: 128, 128>}, {transform_indices = @transform_2, window_bounds = array<i64: 1, 128>}, {transform_indices = @transform_3, window_bounds = array<i64: 1, 1>}, {transform_indices = @transform_4, window_bounds = array<i64: 256, 128>}]} {
    %c0_i32 = arith.constant 0 : i32
    %0 = arith.cmpi eq, %arg2, %c0_i32 : i32
    %1 = arith.extui %0 : i1 to i32
    %c0_i32_0 = arith.constant 0 : i32
    %2 = arith.cmpi ne, %1, %c0_i32_0 : i32
    scf.if %2 {
      %cst_10 = arith.constant 0.000000e+00 : f32
      %12 = vector.broadcast %cst_10 : f32 to vector<256x128xf32>
      %c0_11 = arith.constant 0 : index
      %c0_12 = arith.constant 0 : index
      %13 = vector.load %arg8[%c0_11, %c0_12] : memref<256x128xf32, #tpu.memory_space<vmem>>, vector<256x128xf32>
      tpu.vector_store %arg8[%c0_11, %c0_12], %12 {strides = array<i32>} : memref<256x128xf32, #tpu.memory_space<vmem>>, vector<256x128xf32>,
    } else {
    }
    %c0 = arith.constant 0 : index
    %c0_1 = arith.constant 0 : index
    %3 = vector.load %arg8[%c0, %c0_1] : memref<256x128xf32, #tpu.memory_space<vmem>>, vector<256x128xf32>
    %c0_2 = arith.constant 0 : index
    %c0_3 = arith.constant 0 : index
    %4 = vector.load %arg3[%c0_2, %c0_3] : memref<256x128xf32, #tpu.memory_space<vmem>>, vector<256x128xf32>
    %c0_4 = arith.constant 0 : index
    %c0_5 = arith.constant 0 : index
    %5 = vector.load %arg4[%c0_4, %c0_5] : memref<128x128xf32, #tpu.memory_space<vmem>>, vector<128x128xf32>
    %cst = arith.constant dense<0.000000e+00> : vector<256x128xf32>
    %6 = tpu.matmul %4, %5, %cst {dimension_numbers = #tpu.dot_dimension_numbers<[1], [0], [0], [1], [0, 0, 1, 1], [], []>} : vector<256x128xf32>, vector<128x128xf32>, vector<256x128xf32> -> vector<256x128xf32>
    %7 = arith.addf %3, %6 : vector<256x128xf32>
    %c0_6 = arith.constant 0 : index
    %c0_7 = arith.constant 0 : index
    %8 = vector.load %arg8[%c0_6, %c0_7] : memref<256x128xf32, #tpu.memory_space<vmem>>, vector<256x128xf32>
    tpu.vector_store %arg8[%c0_6, %c0_7], %7 {strides = array<i32>} : memref<256x128xf32, #tpu.memory_space<vmem>>, vector<256x128xf32>,
    %c0_i32_8 = arith.constant 0 : i32
    %9 = arith.cmpi eq, %arg2, %c0_i32_8 : i32
    %10 = arith.extui %9 : i1 to i32
    %c0_i32_9 = arith.constant 0 : i32
    %11 = arith.cmpi ne, %10, %c0_i32_9 : i32
    scf.if %11 {
      %c0_10 = arith.constant 0 : index
      %c0_11 = arith.constant 0 : index
      %12 = vector.load %arg8[%c0_10, %c0_11] : memref<256x128xf32, #tpu.memory_space<vmem>>, vector<256x128xf32>
      %c0_12 = arith.constant 0 : index
      %c0_13 = arith.constant 0 : index
      %13 = vector.load %arg5[%c0_12, %c0_13] : memref<1x128xf32, #tpu.memory_space<vmem>>, vector<1x128xf32>
      %14 = vector.broadcast %13 : vector<1x128xf32> to vector<256x128xf32>
      %15 = arith.addf %12, %14 : vector<256x128xf32>
      %c0_14 = arith.constant 0 : index
      %c0_15 = arith.constant 0 : index
      %16 = memref.load %arg6[%c0_14, %c0_15] : memref<1x1xf32, #tpu.memory_space<smem>>
      %cst_16 = arith.constant 0.000000e+00 : f32
      %17 = vector.broadcast %cst_16 : f32 to vector<256x128xf32>
      %18 = arith.cmpf oge, %15, %17 : vector<256x128xf32>
      %19 = vector.broadcast %16 : f32 to vector<256x128xf32>
      %20 = arith.mulf %19, %15 : vector<256x128xf32>
      %21 = arith.select %18, %15, %20 : vector<256x128xi1>, vector<256x128xf32>
      %c0_17 = arith.constant 0 : index
      %c0_18 = arith.constant 0 : index
      %22 = vector.load %arg7[%c0_17, %c0_18] : memref<256x128xf32, #tpu.memory_space<vmem>>, vector<256x128xf32>
      tpu.vector_store %arg7[%c0_17, %c0_18], %21 {strides = array<i32>} : memref<256x128xf32, #tpu.memory_space<vmem>>, vector<256x128xf32>,
    } else {
    }
    return
  }
  func.func @transform_0(%arg0: i32, %arg1: i32, %arg2: i32) -> (i32, i32) {
    %c0_i32 = arith.constant 0 : i32
    return %arg0, %arg2 : i32, i32
  }
  func.func @transform_1(%arg0: i32, %arg1: i32, %arg2: i32) -> (i32, i32) {
    %c0_i32 = arith.constant 0 : i32
    return %arg2, %arg1 : i32, i32
  }
  func.func @transform_2(%arg0: i32, %arg1: i32, %arg2: i32) -> (i32, i32) {
    %c0_i32 = arith.constant 0 : i32
    %c0_i32_0 = arith.constant 0 : i32
    return %c0_i32, %arg1 : i32, i32
  }
  func.func @transform_3(%arg0: i32, %arg1: i32, %arg2: i32) -> (i32, i32) {
    %c0_i32 = arith.constant 0 : i32
    %c0_i32_0 = arith.constant 0 : i32
    %c0_i32_1 = arith.constant 0 : i32
    return %c0_i32, %c0_i32_0 : i32, i32
  }
  func.func @transform_4(%arg0: i32, %arg1: i32, %arg2: i32) -> (i32, i32) {
    %c0_i32 = arith.constant 0 : i32
    return %arg0, %arg1 : i32, i32
  }
}

</mosaic_0001>

<bundles_post_ra>
// kernel: tile.8
= control target key start
LH: loop header
LB: loop body
LE: loop exit
PB: predicated region body
PF: predicated region fallthrough
CT: control target
= control target key end

     0   :  { %s22_s0 = inlined_call_operand.vmem [shape: f32[8], index: 0, kind: input, shape index: {}]   ;;  %s23_s1 = inlined_call_operand.vmem [shape: f32[4,8], index: 1, kind: output, shape index: {}]  }
   0x1   :  { %v4_v0 = vld [vmem:[%s22_s0] ss:$0 sm:$0xff] }
   0x2   :  { %5 = vst [vmem:[%s23_s1] sm:$0xf] %v4_v0 }

// kernel: tile.9
= control target key start
LH: loop header
LB: loop body
LE: loop exit
PB: predicated region body
PF: predicated region fallthrough
CT: control target
= control target key end

     0   :  { %vm7_vm0 = vcmask 64512   ;;  %s37_s8 = smov 8   ;;  %s38_s9 = smov 16   ;;  %vm13_vm1 = vcmask 261312   ;;  %vm19_vm2 = vcmask 195712   ;;  %vm25_vm3 = vcmask 130112   ;;  %s55_s0 = inlined_call_operand.vmem [shape: f32[4,8], index: 0, kind: input, shape index: {}]   ;;  %s56_s1 = inlined_call_operand.vmem [shape: f32[1,32], index: 1, kind: output, shape index: {}]  }
   0x1   :  { %v4_v0 = vld [vmem:[%s55_s0] sm:$0xf]  ;;  %s36_s0 = smov 24  }
   0x2   :  { %5 = vst [vmem:[#allocation1] sm:$0xf] %v4_v0 }
   0x9   :  { %v10_v1 = vld [vmem:[#allocation1 + $0x3] sm:$0x1]   ;;  %v22_v2 = vld [vmem:[#allocation1 + $0x1] sm:$0x1]   ;;  %v6_v3 = vld [vmem:[#allocation1] sm:$0x1]  }
   0xa   :  { %11 = vrot.lane.b32.xlu0 %v10_v1, %s36_s0  ;;  %23 = vrot.lane.b32.xlu1 %v22_v2, %s37_s8  ;;  %v16_v4 = vld [vmem:[#allocation1 + $0x2] sm:$0x1]   ;;  %8 = vst.msk [vmem:[#allocation0] sm:$0x1] %vm7_vm0, %v6_v3  }
   0xe   :  { %17 = vrot.lane.b32.xlu0 %v16_v4, %s38_s9 }
  0x7c   :  { %v12_v5 = vpop.permute.xlu0 %11   ;;  %v24_v6 = vpop.permute.xlu1 %23  }
  0x7d   :  { %14 = vst.msk [vmem:[#allocation0] sm:$0x1] %vm13_vm1, %v12_v5  }
  0x80   :  { %v18_v7 = vpop.permute.xlu0 %17  }
  0x81   :  { %20 = vst.msk [vmem:[#allocation0] sm:$0x1] %vm19_vm2, %v18_v7  }
  0x82   :  { %26 = vst.msk [vmem:[#allocation0] sm:$0x1] %vm25_vm3, %v24_v6  }
  0x89   :  { %v30_v8 = vld [vmem:[#allocation0] sm:$0x1] }
  0x8a   :  { %32 = vst [vmem:[%s56_s1] sm:$0x1] %v30_v8 }

// kernel: deconv_block_forward.1
= control target key start
LH: loop header
LB: loop body
LE: loop exit
PB: predicated region body
PF: predicated region fallthrough
CT: control target
= control target key end

     0   :  { %s1273_s17 = smov 0   ;;  %s1275_s18 = smov 0   ;;  %s1500_s0 = inlined_call_operand.vmem [shape: f32[512,128], index: 0, kind: input, shape index: {}]   ;;  %s1501_s1 = inlined_call_operand.vmem [shape: f32[128,128], index: 1, kind: input, shape index: {}]   ;;  %s1502_s2 = inlined_call_operand.vmem [shape: f32[1,128], index: 2, kind: input, shape index: {}]   ;;  %s1503_s3 = inlined_call_operand.<no memory space> [shape: f32[1,1], index: 3, kind: input, shape index: {}]   ;;  %s1504_s4 = inlined_call_operand.vmem [shape: f32[512,128], index: 4, kind: output, shape index: {}]  }
   0x1   :  { %9 = sst [smem:[#allocation3]] %s1503_s3  ;;  %s1277_s19 = smov 0  }
   0x2 LB: > { %s34_s3 = sadd.s32 1, %s1239_s18  ;;  %p1013_p0 = scmp.ge.s32.totalorder %s1243_s19, 1  ;;  %s1243_s19 = sphi %s1277_s19, %s15_s19   ;;  %s1239_s18 = sphi %s1275_s18, %s1506_s18   ;;  %s1235_s17 = sphi %s1273_s17, %s1505_s17  }
   0x3   : > { %p36_p1 = scmp.ge.s32.totalorder %s34_s3, 2  ;;  %p214_p2 = scmp.lt.s32.totalorder %s1243_s19, 3 }
   0x5   : > { %s1508_s3 = smov (%p36_p1, %s34_s3), 0  ;;  %p215_p3 = pnand %p1013_p0, %p214_p2 }
   0x6   : > { %v387_v0 = vld [vmem:[%s1501_s1] sm:$0xff] (!%p215_p3)  ;;  %v388_v1 = vld [vmem:[%s1501_s1 + $0x8] sm:$0xff] (!%p215_p3)  ;;  %v389_v2 = vld [vmem:[%s1501_s1 + $0x10] sm:$0xff] (!%p215_p3)  ;;  %s1014_s26 = sshll.u32 (!%p215_p3), %s1235_s17, 5  ;;  %s766_s9 = sld [smem:[#allocation3]] (!%p215_p3) }
   0x7   : > { %218 = sbr.rel (%p215_p3) target bundleno = 289 (0x121), region = 36  ;;  %v1149_v3 = vpack.c.bf16 (!%p215_p3), %v388_v1, %v387_v0  ;;  %v390_v4 = vld [vmem:[%s1501_s1 + $0x18] sm:$0xff] (!%p215_p3)  ;;  %p258_p4 = scmp.lt.s32.totalorder (!%p215_p3), %s1014_s26, 63  ;;  %v391_v6 = vld [vmem:[%s1501_s1 + $0x20] sm:$0xff] (!%p215_p3)  ;;  %v392_v7 = vld [vmem:[%s1501_s1 + $0x28] sm:$0xff] (!%p215_p3) }
   0x8   : > { %v1153_v5 = vpack.c.bf16 (!%p215_p3), %v390_v4, %v389_v2  ;;  %v1157_v8 = vpack.c.bf16 (!%p215_p3), %v392_v7, %v391_v6  ;;  %v393_v9 = vld [vmem:[%s1501_s1 + $0x30] sm:$0xff] (!%p215_p3)  ;;  %v394_v10 = vld [vmem:[%s1501_s1 + $0x38] sm:$0xff] (!%p215_p3)  ;;  %v395_v14 = vld [vmem:[%s1501_s1 + $0x40] sm:$0xff] (!%p215_p3) }
   0x9   : > { %1150 = vmatprep.subr.bf16.mxu0 (!%p215_p3), %v1149_v3  ;;  %1181 = vmatprep.subr.bf16.mxu1 (!%p215_p3), %v1149_v3  ;;  %v1161_v13 = vpack.c.bf16 (!%p215_p3), %v394_v10, %v393_v9  ;;  %v396_v15 = vld [vmem:[%s1501_s1 + $0x48] sm:$0xff] (!%p215_p3)  ;;  %v397_v17 = vld [vmem:[%s1501_s1 + $0x50] sm:$0xff] (!%p215_p3)  ;;  %v398_v18 = vld [vmem:[%s1501_s1 + $0x58] sm:$0xff] (!%p215_p3) }
   0xa   : > { %1152 = vmatpush3.bf16.msra.mxu0 (!%p215_p3), %v1149_v3  ;;  %1189 = vmatpush3.bf16.msra.mxu1 (!%p215_p3), %v1149_v3  ;;  %v1165_v16 = vpack.c.bf16 (!%p215_p3), %v396_v15, %v395_v14  ;;  %v1169_v19 = vpack.c.bf16 (!%p215_p3), %v398_v18, %v397_v17  ;;  %v399_v20 = vld [vmem:[%s1501_s1 + $0x60] sm:$0xff] (!%p215_p3)  ;;  %v400_v21 = vld [vmem:[%s1501_s1 + $0x68] sm:$0xff] (!%p215_p3)  ;;  %v401_v23 = vld [vmem:[%s1501_s1 + $0x70] sm:$0xff] (!%p215_p3) }
   0xb   : > { %1154 = vmatprep.subr.bf16.mxu0 (!%p215_p3), %v1153_v5  ;;  %1182 = vmatprep.subr.bf16.mxu1 (!%p215_p3), %v1153_v5  ;;  %v1173_v22 = vpack.c.bf16 (!%p215_p3), %v400_v21, %v399_v20  ;;  %v402_v24 = vld [vmem:[%s1501_s1 + $0x78] sm:$0xff] (!%p215_p3)  ;;  %v1384_v56 = vld [vmem:[%s1502_s2] ss:$0 sm:$0xff] (!%p215_p3) }
   0xc   : > { %v1177_v25 = vpack.c.bf16 (!%p215_p3), %v402_v24, %v401_v23  ;;  %v1386_v58 = vstv (!%p215_p3), %s766_s9 }
   0xe   : > { %s1510_s26 = smov (!%p258_p4, %s1014_s26), 63  ;;  %1156 = vmatpush3.bf16.msra.mxu0 %v1153_v5  ;;  %1190 = vmatpush3.bf16.msra.mxu1 %v1153_v5 }
   0xf   : > { %s1015_s7 = sshll.u32 %s1510_s26, 3  ;;  %1158 = vmatprep.subr.bf16.mxu0 %v1157_v8  ;;  %1183 = vmatprep.subr.bf16.mxu1 %v1157_v8 }
  0x10   : > { %s1323_s14 = scalar_lea.vmem %s1500_s0, %s1015_s7 }
  0x11   : > { %v355_v11 = vld [vmem:[%s1323_s14] sm:$0xff]  ;;  %v356_v26 = vld [vmem:[%s1323_s14 + $0x8] sm:$0xff]  ;;  %v357_v28 = vld [vmem:[%s1323_s14 + $0x10] sm:$0xff] }
  0x12   : > { %v371_v12 = vld [vmem:[%s1323_s14 + $0x80] sm:$0xff]  ;;  %1101 = vmatprep.mubr.f32.mxu0 %v355_v11  ;;  %1160 = vmatpush3.bf16.msra.mxu0 %v1157_v8  ;;  %v372_v27 = vld [vmem:[%s1323_s14 + $0x88] sm:$0xff]  ;;  %v373_v29 = vld [vmem:[%s1323_s14 + $0x90] sm:$0xff] }
  0x13   : > { %1125 = vmatprep.mubr.f32.mxu1 %v371_v12  ;;  %1191 = vmatpush3.bf16.msra.mxu1 %v1157_v8  ;;  %v358_v30 = vld [vmem:[%s1323_s14 + $0x18] sm:$0xff]  ;;  %v359_v32 = vld [vmem:[%s1323_s14 + $0x20] sm:$0xff]  ;;  %v360_v34 = vld [vmem:[%s1323_s14 + $0x28] sm:$0xff] }
  0x14   : > { %1162 = vmatprep.subr.bf16.mxu0 %v1161_v13  ;;  %1184 = vmatprep.subr.bf16.mxu1 %v1161_v13  ;;  %v374_v31 = vld [vmem:[%s1323_s14 + $0x98] sm:$0xff]  ;;  %v375_v33 = vld [vmem:[%s1323_s14 + $0xa0] sm:$0xff]  ;;  %v376_v35 = vld [vmem:[%s1323_s14 + $0xa8] sm:$0xff] }
  0x15   : > { %v361_v36 = vld [vmem:[%s1323_s14 + $0x30] sm:$0xff]  ;;  %v362_v38 = vld [vmem:[%s1323_s14 + $0x38] sm:$0xff]  ;;  %v363_v40 = vld [vmem:[%s1323_s14 + $0x40] sm:$0xff] }
  0x16   : > { %1164 = vmatpush3.bf16.msra.mxu0 %v1161_v13  ;;  %v377_v37 = vld [vmem:[%s1323_s14 + $0xb0] sm:$0xff]  ;;  %v378_v39 = vld [vmem:[%s1323_s14 + $0xb8] sm:$0xff]  ;;  %v379_v41 = vld [vmem:[%s1323_s14 + $0xc0] sm:$0xff] }
  0x17   : > { %1192 = vmatpush3.bf16.msra.mxu1 %v1161_v13  ;;  %1166 = vmatprep.subr.bf16.mxu0 %v1165_v16  ;;  %v364_v42 = vld [vmem:[%s1323_s14 + $0x48] sm:$0xff]  ;;  %v365_v44 = vld [vmem:[%s1323_s14 + $0x50] sm:$0xff]  ;;  %v366_v46 = vld [vmem:[%s1323_s14 + $0x58] sm:$0xff] }
  0x18   : > { %1185 = vmatprep.subr.bf16.mxu1 %v1165_v16  ;;  %v380_v43 = vld [vmem:[%s1323_s14 + $0xc8] sm:$0xff]  ;;  %v381_v45 = vld [vmem:[%s1323_s14 + $0xd0] sm:$0xff]  ;;  %v382_v47 = vld [vmem:[%s1323_s14 + $0xd8] sm:$0xff] }
  0x19   : > { %v367_v48 = vld [vmem:[%s1323_s14 + $0x60] sm:$0xff]  ;;  %v368_v50 = vld [vmem:[%s1323_s14 + $0x68] sm:$0xff]  ;;  %v369_v52 = vld [vmem:[%s1323_s14 + $0x70] sm:$0xff] }
  0x1a   : > { %1168 = vmatpush3.bf16.msra.mxu0 %v1165_v16  ;;  %v383_v49 = vld [vmem:[%s1323_s14 + $0xe0] sm:$0xff]  ;;  %v384_v51 = vld [vmem:[%s1323_s14 + $0xe8] sm:$0xff]  ;;  %v385_v53 = vld [vmem:[%s1323_s14 + $0xf0] sm:$0xff] }
  0x1b   : > { %1193 = vmatpush3.bf16.msra.mxu1 %v1165_v16  ;;  %1170 = vmatprep.subr.bf16.mxu0 %v1169_v19  ;;  %v370_v54 = vld [vmem:[%s1323_s14 + $0x78] sm:$0xff] }
  0x1c   : > { %1186 = vmatprep.subr.bf16.mxu1 %v1169_v19  ;;  %v386_v55 = vld [vmem:[%s1323_s14 + $0xf8] sm:$0xff]  ;;  %s1397_s14 = scalar_lea.vmem %s1504_s4, %s1015_s7 }
  0x1e   : > { %1172 = vmatpush3.bf16.msra.mxu0 %v1169_v19 }
  0x1f   : > { %1194 = vmatpush3.bf16.msra.mxu1 %v1169_v19  ;;  %1174 = vmatprep.subr.bf16.mxu0 %v1173_v22 }
  0x20   : > { %1187 = vmatprep.subr.bf16.mxu1 %v1173_v22 }
  0x22   : > { %1176 = vmatpush3.bf16.msra.mxu0 %v1173_v22 }
  0x23   : > { %1195 = vmatpush3.bf16.msra.mxu1 %v1173_v22  ;;  %1178 = vmatprep.subr.bf16.mxu0 %v1177_v25 }
  0x24   : > { %1188 = vmatprep.subr.bf16.mxu1 %v1177_v25 }
  0x26   : > { %1180 = vmatpush3.bf16.msra.mxu0 %v1177_v25 }
  0x27   : > { %1196 = vmatpush3.bf16.msra.mxu1 %v1177_v25 }
  0x29   : > { %1102 = vmatmul.mubr.f32.vlgmr.msra.gmra.mrb[0].mxu0 %v356_v26 }
  0x2a   : > { %1126 = vmatmul.mubr.f32.vlgmr.msra.gmra.mrb[0].mxu1 %v372_v27  ;;  %1104 = vmatprep.mubr.f32.mxu0 %v357_v28 }
  0x2b   : > { %1128 = vmatprep.mubr.f32.mxu1 %v373_v29 }
  0x2d   : > { %1105 = vmatmul.mubr.f32.gmra.mrb[2].mxu0 %v358_v30 }
  0x2e   : > { %1129 = vmatmul.mubr.f32.gmra.mrb[2].mxu1 %v374_v31  ;;  %1107 = vmatprep.mubr.f32.mxu0 %v359_v32 }
  0x2f   : > { %1131 = vmatprep.mubr.f32.mxu1 %v375_v33 }
  0x31   : > { %1108 = vmatmul.mubr.f32.gmra.mrb[4].mxu0 %v360_v34 }
  0x32   : > { %1132 = vmatmul.mubr.f32.gmra.mrb[4].mxu1 %v376_v35  ;;  %1110 = vmatprep.mubr.f32.mxu0 %v361_v36 }
  0x33   : > { %1134 = vmatprep.mubr.f32.mxu1 %v377_v37 }
  0x35   : > { %1111 = vmatmul.mubr.f32.gmra.mrb[6].mxu0 %v362_v38 }
  0x36   : > { %1135 = vmatmul.mubr.f32.gmra.mrb[6].mxu1 %v378_v39  ;;  %1113 = vmatprep.mubr.f32.mxu0 %v363_v40 }
  0x37   : > { %1137 = vmatprep.mubr.f32.mxu1 %v379_v41 }
  0x39   : > { %1114 = vmatmul.mubr.f32.gmra.mrb[8].mxu0 %v364_v42 }
  0x3a   : > { %1138 = vmatmul.mubr.f32.gmra.mrb[8].mxu1 %v380_v43  ;;  %1116 = vmatprep.mubr.f32.mxu0 %v365_v44 }
  0x3b   : > { %1140 = vmatprep.mubr.f32.mxu1 %v381_v45 }
  0x3d   : > { %1117 = vmatmul.mubr.f32.gmra.mrb[10].mxu0 %v366_v46 }
  0x3e   : > { %1141 = vmatmul.mubr.f32.gmra.mrb[10].mxu1 %v382_v47  ;;  %1119 = vmatprep.mubr.f32.mxu0 %v367_v48 }
  0x3f   : > { %1143 = vmatprep.mubr.f32.mxu1 %v383_v49 }
  0x41   : > { %1120 = vmatmul.mubr.f32.gmra.mrb[12].mxu0 %v368_v50 }
  0x42   : > { %1144 = vmatmul.mubr.f32.gmra.mrb[12].mxu1 %v384_v51  ;;  %1122 = vmatprep.mubr.f32.mxu0 %v369_v52 }
  0x43   : > { %1146 = vmatprep.mubr.f32.mxu1 %v385_v53 }
  0x45   : > { %1123 = vmatmul.mubr.f32.gmra.mrb[14].mxu0 %v370_v54 }
  0x46   : > { %1147 = vmatmul.mubr.f32.gmra.mrb[14].mxu1 %v386_v55 }
  0xfc   : > { %v1103_v57 = vpop.f32.mrb[0].mxu0 }
  0xfd   : > { %v1127_v59 = vpop.f32.mrb[0].mxu1  ;;  %v735_v60 = vadd.f32 %v1103_v57, %v1384_v56  ;;  %v469_v62 = vpop.f32.mrb[1].mxu0 }
  0xfe   : > { %v751_v61 = vadd.f32 %v1127_v59, %v1384_v56  ;;  %v549_v63 = vpop.f32.mrb[1].mxu1  ;;  %v734_v0 = vadd.f32 %v1384_v56, %v469_v62 }
  0xff   : > { %v750_v1 = vadd.f32 %v1384_v56, %v549_v63  ;;  %vm768_vm0 = vcmp.ge.f32.partialorder %v735_v60, 0.0  ;;  %v801_v2 = vmul.f32 %v1386_v58, %v735_v60 }
 0x100   : > { %vm784_vm1 = vcmp.ge.f32.partialorder %v751_v61, 0.0  ;;  %v817_v3 = vmul.f32 %v1386_v58, %v751_v61  ;;  %vm767_vm2 = vcmp.ge.f32.partialorder %v734_v0, 0.0  ;;  %v800_v4 = vmul.f32 %v1386_v58, %v734_v0  ;;  %v1106_v6 = vpop.f32.mrb[2].mxu0 }
 0x101   : > { %vm783_vm3 = vcmp.ge.f32.partialorder %v750_v1, 0.0  ;;  %v816_v5 = vmul.f32 %v1386_v58, %v750_v1  ;;  %v1130_v7 = vpop.f32.mrb[2].mxu1  ;;  %v833_v8 = vsel %vm768_vm0, %v735_v60, %v801_v2  ;;  %v737_v10 = vadd.f32 %v1106_v6, %v1384_v56  ;;  %v479_v12 = vpop.f32.mrb[3].mxu0 }
 0x102   : > { %v849_v9 = vsel %vm784_vm1, %v751_v61, %v817_v3  ;;  %v753_v11 = vadd.f32 %v1130_v7, %v1384_v56  ;;  %v559_v13 = vpop.f32.mrb[3].mxu1  ;;  %865 = vst [vmem:[%s1397_s14 + $0x8] sm:$0xff] %v833_v8  ;;  %v832_v14 = vsel %vm767_vm2, %v734_v0, %v800_v4  ;;  %v736_v16 = vadd.f32 %v1384_v56, %v479_v12 }
 0x103   : > { %881 = vst [vmem:[%s1397_s14 + $0x88] sm:$0xff] %v849_v9  ;;  %v848_v15 = vsel %vm783_vm3, %v750_v1, %v816_v5  ;;  %v752_v17 = vadd.f32 %v1384_v56, %v559_v13  ;;  %864 = vst [vmem:[%s1397_s14] sm:$0xff] %v832_v14  ;;  %vm770_vm4 = vcmp.ge.f32.partialorder %v737_v10, 0.0  ;;  %v803_v18 = vmul.f32 %v1386_v58, %v737_v10 }
 0x104   : > { %880 = vst [vmem:[%s1397_s14 + $0x80] sm:$0xff] %v848_v15  ;;  %vm786_vm5 = vcmp.ge.f32.partialorder %v753_v11, 0.0  ;;  %v819_v19 = vmul.f32 %v1386_v58, %v753_v11  ;;  %vm769_vm6 = vcmp.ge.f32.partialorder %v736_v16, 0.0  ;;  %v802_v20 = vmul.f32 %v1386_v58, %v736_v16  ;;  %v1109_v22 = vpop.f32.mrb[4].mxu0 }
 0x105   : > { %vm785_vm7 = vcmp.ge.f32.partialorder %v752_v17, 0.0  ;;  %v818_v21 = vmul.f32 %v1386_v58, %v752_v17  ;;  %v1133_v23 = vpop.f32.mrb[4].mxu1  ;;  %v835_v24 = vsel %vm770_vm4, %v737_v10, %v803_v18  ;;  %v739_v26 = vadd.f32 %v1109_v22, %v1384_v56  ;;  %v489_v28 = vpop.f32.mrb[5].mxu0 }
 0x106   : > { %v851_v25 = vsel %vm786_vm5, %v753_v11, %v819_v19  ;;  %v755_v27 = vadd.f32 %v1133_v23, %v1384_v56  ;;  %v569_v29 = vpop.f32.mrb[5].mxu1  ;;  %867 = vst [vmem:[%s1397_s14 + $0x18] sm:$0xff] %v835_v24  ;;  %v834_v30 = vsel %vm769_vm6, %v736_v16, %v802_v20  ;;  %v738_v32 = vadd.f32 %v1384_v56, %v489_v28 }
 0x107   : > { %883 = vst [vmem:[%s1397_s14 + $0x98] sm:$0xff] %v851_v25  ;;  %v850_v31 = vsel %vm785_vm7, %v752_v17, %v818_v21  ;;  %v754_v33 = vadd.f32 %v1384_v56, %v569_v29  ;;  %866 = vst [vmem:[%s1397_s14 + $0x10] sm:$0xff] %v834_v30  ;;  %vm772_vm8 = vcmp.ge.f32.partialorder %v739_v26, 0.0  ;;  %v805_v34 = vmul.f32 %v1386_v58, %v739_v26 }
 0x108   : > { %882 = vst [vmem:[%s1397_s14 + $0x90] sm:$0xff] %v850_v31  ;;  %vm788_vm9 = vcmp.ge.f32.partialorder %v755_v27, 0.0  ;;  %v821_v35 = vmul.f32 %v1386_v58, %v755_v27  ;;  %vm771_vm10 = vcmp.ge.f32.partialorder %v738_v32, 0.0  ;;  %v804_v36 = vmul.f32 %v1386_v58, %v738_v32  ;;  %v1112_v38 = vpop.f32.mrb[6].mxu0 }
 0x109   : > { %vm787_vm11 = vcmp.ge.f32.partialorder %v754_v33, 0.0  ;;  %v820_v37 = vmul.f32 %v1386_v58, %v754_v33  ;;  %v1136_v39 = vpop.f32.mrb[6].mxu1  ;;  %v837_v40 = vsel %vm772_vm8, %v739_v26, %v805_v34  ;;  %v741_v42 = vadd.f32 %v1112_v38, %v1384_v56  ;;  %v499_v44 = vpop.f32.mrb[7].mxu0 }
 0x10a   : > { %v853_v41 = vsel %vm788_vm9, %v755_v27, %v821_v35  ;;  %v757_v43 = vadd.f32 %v1136_v39, %v1384_v56  ;;  %v579_v45 = vpop.f32.mrb[7].mxu1  ;;  %869 = vst [vmem:[%s1397_s14 + $0x28] sm:$0xff] %v837_v40  ;;  %v836_v46 = vsel %vm771_vm10, %v738_v32, %v804_v36  ;;  %v740_v48 = vadd.f32 %v1384_v56, %v499_v44 }
 0x10b   : > { %885 = vst [vmem:[%s1397_s14 + $0xa8] sm:$0xff] %v853_v41  ;;  %v852_v47 = vsel %vm787_vm11, %v754_v33, %v820_v37  ;;  %v756_v49 = vadd.f32 %v1384_v56, %v579_v45  ;;  %868 = vst [vmem:[%s1397_s14 + $0x20] sm:$0xff] %v836_v46  ;;  %vm774_vm12 = vcmp.ge.f32.partialorder %v741_v42, 0.0  ;;  %v807_v50 = vmul.f32 %v1386_v58, %v741_v42 }
 0x10c   : > { %884 = vst [vmem:[%s1397_s14 + $0xa0] sm:$0xff] %v852_v47  ;;  %vm790_vm13 = vcmp.ge.f32.partialorder %v757_v43, 0.0  ;;  %v823_v51 = vmul.f32 %v1386_v58, %v757_v43  ;;  %vm773_vm14 = vcmp.ge.f32.partialorder %v740_v48, 0.0  ;;  %v806_v52 = vmul.f32 %v1386_v58, %v740_v48  ;;  %v1115_v54 = vpop.f32.mrb[8].mxu0 }
 0x10d   : > { %vm789_vm15 = vcmp.ge.f32.partialorder %v756_v49, 0.0  ;;  %v822_v53 = vmul.f32 %v1386_v58, %v756_v49  ;;  %v1139_v55 = vpop.f32.mrb[8].mxu1  ;;  %v839_v57 = vsel %vm774_vm12, %v741_v42, %v807_v50  ;;  %v743_v60 = vadd.f32 %v1115_v54, %v1384_v56  ;;  %v509_v62 = vpop.f32.mrb[9].mxu0 }
 0x10e   : > { %v855_v59 = vsel %vm790_vm13, %v757_v43, %v823_v51  ;;  %v759_v61 = vadd.f32 %v1139_v55, %v1384_v56  ;;  %v589_v63 = vpop.f32.mrb[9].mxu1  ;;  %871 = vst [vmem:[%s1397_s14 + $0x38] sm:$0xff] %v839_v57  ;;  %v838_v0 = vsel %vm773_vm14, %v740_v48, %v806_v52  ;;  %v742_v2 = vadd.f32 %v1384_v56, %v509_v62 }
 0x10f   : > { %887 = vst [vmem:[%s1397_s14 + $0xb8] sm:$0xff] %v855_v59  ;;  %v854_v1 = vsel %vm789_vm15, %v756_v49, %v822_v53  ;;  %v758_v3 = vadd.f32 %v1384_v56, %v589_v63  ;;  %870 = vst [vmem:[%s1397_s14 + $0x30] sm:$0xff] %v838_v0  ;;  %vm776_vm0 = vcmp.ge.f32.partialorder %v743_v60, 0.0  ;;  %v809_v4 = vmul.f32 %v1386_v58, %v743_v60 }
 0x110   : > { %886 = vst [vmem:[%s1397_s14 + $0xb0] sm:$0xff] %v854_v1  ;;  %vm792_vm1 = vcmp.ge.f32.partialorder %v759_v61, 0.0  ;;  %v825_v5 = vmul.f32 %v1386_v58, %v759_v61  ;;  %vm775_vm2 = vcmp.ge.f32.partialorder %v742_v2, 0.0  ;;  %v808_v6 = vmul.f32 %v1386_v58, %v742_v2  ;;  %v1118_v8 = vpop.f32.mrb[10].mxu0 }
 0x111   : > { %vm791_vm3 = vcmp.ge.f32.partialorder %v758_v3, 0.0  ;;  %v824_v7 = vmul.f32 %v1386_v58, %v758_v3  ;;  %v1142_v9 = vpop.f32.mrb[10].mxu1  ;;  %v841_v10 = vsel %vm776_vm0, %v743_v60, %v809_v4  ;;  %v745_v12 = vadd.f32 %v1118_v8, %v1384_v56  ;;  %v519_v14 = vpop.f32.mrb[11].mxu0 }
 0x112   : > { %v857_v11 = vsel %vm792_vm1, %v759_v61, %v825_v5  ;;  %v761_v13 = vadd.f32 %v1142_v9, %v1384_v56  ;;  %v599_v15 = vpop.f32.mrb[11].mxu1  ;;  %873 = vst [vmem:[%s1397_s14 + $0x48] sm:$0xff] %v841_v10  ;;  %v840_v16 = vsel %vm775_vm2, %v742_v2, %v808_v6  ;;  %v744_v18 = vadd.f32 %v1384_v56, %v519_v14 }
 0x113   : > { %889 = vst [vmem:[%s1397_s14 + $0xc8] sm:$0xff] %v857_v11  ;;  %v856_v17 = vsel %vm791_vm3, %v758_v3, %v824_v7  ;;  %v760_v19 = vadd.f32 %v1384_v56, %v599_v15  ;;  %872 = vst [vmem:[%s1397_s14 + $0x40] sm:$0xff] %v840_v16  ;;  %vm778_vm4 = vcmp.ge.f32.partialorder %v745_v12, 0.0  ;;  %v811_v20 = vmul.f32 %v1386_v58, %v745_v12 }
 0x114   : > { %888 = vst [vmem:[%s1397_s14 + $0xc0] sm:$0xff] %v856_v17  ;;  %vm794_vm5 = vcmp.ge.f32.partialorder %v761_v13, 0.0  ;;  %v827_v21 = vmul.f32 %v1386_v58, %v761_v13  ;;  %vm777_vm6 = vcmp.ge.f32.partialorder %v744_v18, 0.0  ;;  %v810_v22 = vmul.f32 %v1386_v58, %v744_v18  ;;  %v1121_v24 = vpop.f32.mrb[12].mxu0 }
 0x115   : > { %vm793_vm7 = vcmp.ge.f32.partialorder %v760_v19, 0.0  ;;  %v826_v23 = vmul.f32 %v1386_v58, %v760_v19  ;;  %v1145_v25 = vpop.f32.mrb[12].mxu1  ;;  %v843_v26 = vsel %vm778_vm4, %v745_v12, %v811_v20  ;;  %v747_v28 = vadd.f32 %v1121_v24, %v1384_v56  ;;  %v529_v30 = vpop.f32.mrb[13].mxu0 }
 0x116   : > { %v859_v27 = vsel %vm794_vm5, %v761_v13, %v827_v21  ;;  %v763_v29 = vadd.f32 %v1145_v25, %v1384_v56  ;;  %v609_v31 = vpop.f32.mrb[13].mxu1  ;;  %875 = vst [vmem:[%s1397_s14 + $0x58] sm:$0xff] %v843_v26  ;;  %v842_v32 = vsel %vm777_vm6, %v744_v18, %v810_v22  ;;  %v746_v34 = vadd.f32 %v1384_v56, %v529_v30 }
 0x117   : > { %891 = vst [vmem:[%s1397_s14 + $0xd8] sm:$0xff] %v859_v27  ;;  %v858_v33 = vsel %vm793_vm7, %v760_v19, %v826_v23  ;;  %v762_v35 = vadd.f32 %v1384_v56, %v609_v31  ;;  %874 = vst [vmem:[%s1397_s14 + $0x50] sm:$0xff] %v842_v32  ;;  %vm780_vm8 = vcmp.ge.f32.partialorder %v747_v28, 0.0  ;;  %v813_v36 = vmul.f32 %v1386_v58, %v747_v28 }
 0x118   : > { %890 = vst [vmem:[%s1397_s14 + $0xd0] sm:$0xff] %v858_v33  ;;  %vm796_vm9 = vcmp.ge.f32.partialorder %v763_v29, 0.0  ;;  %v829_v37 = vmul.f32 %v1386_v58, %v763_v29  ;;  %vm779_vm10 = vcmp.ge.f32.partialorder %v746_v34, 0.0  ;;  %v812_v38 = vmul.f32 %v1386_v58, %v746_v34  ;;  %v1124_v40 = vpop.f32.mrb[14].mxu0 }
 0x119   : > { %vm795_vm11 = vcmp.ge.f32.partialorder %v762_v35, 0.0  ;;  %v828_v39 = vmul.f32 %v1386_v58, %v762_v35  ;;  %v1148_v41 = vpop.f32.mrb[14].mxu1  ;;  %v845_v42 = vsel %vm780_vm8, %v747_v28, %v813_v36  ;;  %v749_v44 = vadd.f32 %v1124_v40, %v1384_v56  ;;  %v539_v46 = vpop.f32.mrb[15].mxu0 }
 0x11a   : > { %v861_v43 = vsel %vm796_vm9, %v763_v29, %v829_v37  ;;  %v765_v45 = vadd.f32 %v1148_v41, %v1384_v56  ;;  %v619_v47 = vpop.f32.mrb[15].mxu1  ;;  %877 = vst [vmem:[%s1397_s14 + $0x68] sm:$0xff] %v845_v42  ;;  %v844_v48 = vsel %vm779_vm10, %v746_v34, %v812_v38  ;;  %v748_v50 = vadd.f32 %v1384_v56, %v539_v46 }
 0x11b   : > { %893 = vst [vmem:[%s1397_s14 + $0xe8] sm:$0xff] %v861_v43  ;;  %v860_v49 = vsel %vm795_vm11, %v762_v35, %v828_v39  ;;  %v764_v51 = vadd.f32 %v1384_v56, %v619_v47  ;;  %876 = vst [vmem:[%s1397_s14 + $0x60] sm:$0xff] %v844_v48  ;;  %vm782_vm12 = vcmp.ge.f32.partialorder %v749_v44, 0.0  ;;  %v815_v52 = vmul.f32 %v1386_v58, %v749_v44 }
 0x11c   : > { %892 = vst [vmem:[%s1397_s14 + $0xe0] sm:$0xff] %v860_v49  ;;  %vm798_vm13 = vcmp.ge.f32.partialorder %v765_v45, 0.0  ;;  %v831_v53 = vmul.f32 %v1386_v58, %v765_v45  ;;  %vm781_vm14 = vcmp.ge.f32.partialorder %v748_v50, 0.0  ;;  %v814_v54 = vmul.f32 %v1386_v58, %v748_v50 }
 0x11d   : > { %vm797_vm15 = vcmp.ge.f32.partialorder %v764_v51, 0.0  ;;  %v830_v55 = vmul.f32 %v1386_v58, %v764_v51  ;;  %v847_v57 = vsel %vm782_vm12, %v749_v44, %v815_v52 }
 0x11e   : > { %v863_v59 = vsel %vm798_vm13, %v765_v45, %v831_v53  ;;  %879 = vst [vmem:[%s1397_s14 + $0x78] sm:$0xff] %v847_v57  ;;  %v846_v56 = vsel %vm781_vm14, %v748_v50, %v814_v54 }
 0x11f   : > { %895 = vst [vmem:[%s1397_s14 + $0xf8] sm:$0xff] %v863_v59  ;;  %v862_v60 = vsel %vm797_vm15, %v764_v51, %v830_v55  ;;  %878 = vst [vmem:[%s1397_s14 + $0x70] sm:$0xff] %v846_v56 }
 0x120   : > { %894 = vst [vmem:[%s1397_s14 + $0xf0] sm:$0xff] %v862_v60 }
 0x121 PF: > { %s15_s19 = sadd.s32 1, %s1243_s19   ;;  %s1505_s17 = smov %s1239_s18 }
 0x122   : > { %p12_p5 = scmp.ge.s32.totalorder %s15_s19, 4   ;;  %s1506_s18 = smov %s1508_s3 }
 0x124   :  { %14 = sbr.rel (!%p12_p5) target bundleno = 2 (0x2), region = 80 }

</bundles_post_ra>
